<compile_context>
chip_gen: v7x
topology: tpu7x:2x2x1
jax: 0.10.0
libtpu: 0.0.40
codegen_flags: <defaults>
</compile_context>

<pallas_src>
import functools

import numpy as np
import jax
import jax.numpy as jnp
from jax.experimental import pallas as pl
from jax.experimental.pallas import tpu as pltpu


# 48 MiB scoped VMEM: plenty for the worst-case tiles here (<10 MiB), leaves
# headroom on v7x's 64 MiB physical VMEM, and is well under v5e/v6e's 128 MiB.
_VMEM_LIMIT = 48 * 1024 * 1024


# ----------------------------------------------------------------------------
# Pallas kernels
# ----------------------------------------------------------------------------
def _gemm_kernel(x_ref, w_ref, b_ref, o_ref, *, relu):
    """out = x @ w + bias [optional ReLU].  BN scale is pre-folded into w.

    Operands are bf16 (MXU-native); accumulation happens in f32."""
    acc = jnp.dot(x_ref[...], w_ref[...], preferred_element_type=jnp.float32)
    acc = acc + b_ref[...]
    if relu:
        acc = jnp.maximum(acc, 0.0)
    o_ref[...] = acc.astype(o_ref.dtype)


def fused_gemm(x, w, bias, *, relu, out_dtype=jnp.bfloat16):
    """x:(M,K) @ w:(K,N) + bias:(1,N).  2-D (M,N) grid; K stays whole in VMEM.

    No jnp.pad / out[:M] round-trips: ragged last M/N blocks are masked by
    Pallas on store (garbage in the padded region never reaches HBM)."""
    M, K = x.shape
    N = w.shape[1]
    # M tile: 256 fills the 256-wide MXU on v6e/v7x; shrink for small M so we
    # don't waste MXU rows on padding.
    if M >= 256:
        tm = 256
    elif M >= 128:
        tm = 128
    else:
        tm = M                      # full-dim block (allowed for any size)
    # N tile: multiple of 128 keeps output stores lane-dense and gives the
    # pipeline (and the 2nd TensorCore on v7x) >=2 steps on wide late layers.
    tn = 256 if N > 256 else N
    grid = (pl.cdiv(M, tm), pl.cdiv(N, tn))
    return pl.pallas_call(
        functools.partial(_gemm_kernel, relu=relu),
        out_shape=jax.ShapeDtypeStruct((M, N), out_dtype),
        grid=grid,
        in_specs=[
            pl.BlockSpec((tm, K), lambda i, j: (i, 0)),   # revisited across j
            pl.BlockSpec((K, tn), lambda i, j: (0, j)),   # streamed over N
            pl.BlockSpec((1, tn), lambda i, j: (0, j)),
        ],
        out_specs=pl.BlockSpec((tm, tn), lambda i, j: (i, j)),
        compiler_params=pltpu.CompilerParams(
            dimension_semantics=("parallel", "parallel"),
            vmem_limit_bytes=_VMEM_LIMIT,
        ),
    )(x, w, bias)


def _pool3x3_kernel(x_ref, o_ref, *, op, inv_count):
    """3x3 stride-1 pooling over one batch element (input pre-padded in glue)."""
    x = x_ref[0].astype(jnp.float32)             # (Hp, Wp, C)
    ho, wo = o_ref.shape[1], o_ref.shape[2]
    acc = None
    for di in range(3):
        for dj in range(3):
            v = x[di:di + ho, dj:dj + wo, :]
            if acc is None:
                acc = v
            elif op == "max":
                acc = jnp.maximum(acc, v)
            else:
                acc = acc + v
    if op == "avg":
        acc = acc * inv_count
    o_ref[0] = acc.astype(o_ref.dtype)


def pool3x3(x, *, op, stride, padding):
    """3x3 pooling, NHWC bf16.  avg matches torch F.avg_pool2d
    (count_include_pad=True): divide by 9."""
    B, H, W, C = x.shape
    if padding:
        x = jnp.pad(x, ((0, 0), (padding, padding), (padding, padding), (0, 0)))
    Hp, Wp = H + 2 * padding, W + 2 * padding
    Ho, Wo = Hp - 2, Wp - 2
    out = pl.pallas_call(
        functools.partial(_pool3x3_kernel, op=op, inv_count=1.0 / 9.0),
        out_shape=jax.ShapeDtypeStruct((B, Ho, Wo, C), x.dtype),
        grid=(B,),
        in_specs=[pl.BlockSpec((1, Hp, Wp, C), lambda b: (b, 0, 0, 0))],
        out_specs=pl.BlockSpec((1, Ho, Wo, C), lambda b: (b, 0, 0, 0)),
        compiler_params=pltpu.CompilerParams(
            dimension_semantics=("parallel",),
            vmem_limit_bytes=_VMEM_LIMIT,
        ),
    )(x)
    if stride == 2:
        # TODO(synk): fold the stride-2 subsample into the kernel (strided
        # writeback) to drop the extra stride-1 HBM pass + XLA slice.
        out = out[:, ::2, ::2, :]
    return out


# ----------------------------------------------------------------------------
# Layer wrappers (glue: im2col / padding / reshapes; hot path is in Pallas)
# ----------------------------------------------------------------------------
def basic_conv(x, p, *, stride=(1, 1), padding=(0, 0)):
    """torchvision BasicConv2d (eval): Conv2d(bias=False) -> BN(eps=1e-3) -> ReLU."""
    B, H, W, C = x.shape
    kh, kw = p["kh"], p["kw"]
    sh, sw = stride
    ph, pw = padding
    if ph or pw:
        x = jnp.pad(x, ((0, 0), (ph, ph), (pw, pw), (0, 0)))
    Hp, Wp = H + 2 * ph, W + 2 * pw
    Ho = (Hp - kh) // sh + 1
    Wo = (Wp - kw) // sw + 1
    if kh == 1 and kw == 1 and sh == 1 and sw == 1:
        xm = x.reshape(B * Ho * Wo, C)            # 1x1 conv: pure reshape, no blow-up
    else:
        # TODO(synk): stream the kh*kw taps as an in-kernel reduction axis
        # (shifted input BlockSpecs) instead of materializing im2col in HBM.
        cols = []
        for di in range(kh):
            for dj in range(kw):
                cols.append(
                    jax.lax.slice(
                        x,
                        (0, di, dj, 0),
                        (B, di + (Ho - 1) * sh + 1, dj + (Wo - 1) * sw + 1, C),
                        (1, sh, sw, 1),
                    )
                )
        patches = jnp.stack(cols, axis=3)          # (B, Ho, Wo, kh*kw, C), bf16
        xm = patches.reshape(B * Ho * Wo, kh * kw * C)
    y = fused_gemm(xm, p["w"], p["b"], relu=True)
    return y.reshape(B, Ho, Wo, -1)


def linear(x, p, *, relu, out_dtype=jnp.bfloat16):
    return fused_gemm(x, p["w"], p["b"], relu=relu, out_dtype=out_dtype)


# ----------------------------------------------------------------------------
# Parameter construction (deterministic, synthetic init; BN folded, bf16 weights)
# ----------------------------------------------------------------------------
def init_params(key):
    keys = iter(jax.random.split(key, 256))

    def conv_p(cin, cout, kh, kw):
        fan_in = kh * kw * cin
        w = jax.random.normal(next(keys), (kh, kw, cin, cout), jnp.float32)
        w = w * np.float32(np.sqrt(2.0 / fan_in))
        # BN eval with default running stats: gamma=1, beta=0, mean=0, var=1, eps=1e-3
        # -> scale = 1/sqrt(1+1e-3) folded into the weights, bias = 0.
        scale = np.float32(1.0 / np.sqrt(1.0 + 1e-3))
        return dict(
            w=(w.reshape(fan_in, cout) * scale).astype(jnp.bfloat16),
            b=jnp.zeros((1, cout), jnp.float32),
            kh=kh,
            kw=kw,
        )

    def linear_p(cin, cout):
        w = jax.random.normal(next(keys), (cin, cout), jnp.float32) / np.float32(np.sqrt(cin))
        return dict(w=w.astype(jnp.bfloat16), b=jnp.zeros((1, cout), jnp.float32))

    def inception_a(cin, pool_features):
        return dict(
            b1=conv_p(cin, 64, 1, 1),
            b5_1=conv_p(cin, 48, 1, 1), b5_2=conv_p(48, 64, 5, 5),
            b3d_1=conv_p(cin, 64, 1, 1), b3d_2=conv_p(64, 96, 3, 3), b3d_3=conv_p(96, 96, 3, 3),
            bp=conv_p(cin, pool_features, 1, 1),
        )

    def inception_b(cin):
        return dict(
            b3=conv_p(cin, 384, 3, 3),
            b3d_1=conv_p(cin, 64, 1, 1), b3d_2=conv_p(64, 96, 3, 3), b3d_3=conv_p(96, 96, 3, 3),
        )

    def inception_c(cin, c7):
        return dict(
            b1=conv_p(cin, 192, 1, 1),
            b7_1=conv_p(cin, c7, 1, 1), b7_2=conv_p(c7, c7, 1, 7), b7_3=conv_p(c7, 192, 7, 1),
            b7d_1=conv_p(cin, c7, 1, 1), b7d_2=conv_p(c7, c7, 7, 1), b7d_3=conv_p(c7, c7, 1, 7),
            b7d_4=conv_p(c7, c7, 7, 1), b7d_5=conv_p(c7, 192, 1, 7),
            bp=conv_p(cin, 192, 1, 1),
        )

    def inception_d(cin):
        return dict(
            b3_1=conv_p(cin, 192, 1, 1), b3_2=conv_p(192, 320, 3, 3),
            b7_1=conv_p(cin, 192, 1, 1), b7_2=conv_p(192, 192, 1, 7),
            b7_3=conv_p(192, 192, 7, 1), b7_4=conv_p(192, 192, 3, 3),
        )

    def inception_e(cin):
        return dict(
            b1=conv_p(cin, 320, 1, 1),
            b3_1=conv_p(cin, 384, 1, 1), b3_2a=conv_p(384, 384, 1, 3), b3_2b=conv_p(384, 384, 3, 1),
            b3d_1=conv_p(cin, 448, 1, 1), b3d_2=conv_p(448, 384, 3, 3),
            b3d_3a=conv_p(384, 384, 1, 3), b3d_3b=conv_p(384, 384, 3, 1),
            bp=conv_p(cin, 192, 1, 1),
        )

    p = {
        # stem (grayscale=True: first conv is 1 -> 32)
        "Conv2d_1a_3x3": conv_p(1, 32, 3, 3),
        "Conv2d_2a_3x3": conv_p(32, 32, 3, 3),
        "Conv2d_2b_3x3": conv_p(32, 64, 3, 3),
        "Conv2d_3b_1x1": conv_p(64, 80, 1, 1),
        "Conv2d_4a_3x3": conv_p(80, 192, 3, 3),
        "Mixed_5b": inception_a(192, 32),
        "Mixed_5c": inception_a(256, 64),
        "Mixed_5d": inception_a(288, 64),
        "Mixed_6a": inception_b(288),
        "Mixed_6b": inception_c(768, 128),
        "Mixed_6c": inception_c(768, 160),
        "Mixed_6d": inception_c(768, 160),
        "Mixed_6e": inception_c(768, 192),
        "Mixed_7a": inception_d(768),
        "Mixed_7b": inception_e(1280),
        "Mixed_7c": inception_e(2048),
        # head
        "sex_fc": linear_p(2, 32),           # sex_encoding='onehot'
        "fc1": linear_p(2048 + 32, 1000),
        "fc2": linear_p(1000, 1),
    }
    return p


# ----------------------------------------------------------------------------
# Inception blocks (eval-mode forward)
# ----------------------------------------------------------------------------
def inception_a_fwd(x, p):
    b1 = basic_conv(x, p["b1"])
    b5 = basic_conv(x, p["b5_1"])
    b5 = basic_conv(b5, p["b5_2"], padding=(2, 2))
    bd = basic_conv(x, p["b3d_1"])
    bd = basic_conv(bd, p["b3d_2"], padding=(1, 1))
    bd = basic_conv(bd, p["b3d_3"], padding=(1, 1))
    bp = pool3x3(x, op="avg", stride=1, padding=1)
    bp = basic_conv(bp, p["bp"])
    # TODO(synk): write branch outputs directly into channel offsets of a
    # preallocated buffer (out_spec offset / input_output_aliases) to skip concat.
    return jnp.concatenate([b1, b5, bd, bp], axis=-1)


def inception_b_fwd(x, p):
    b3 = basic_conv(x, p["b3"], stride=(2, 2))
    bd = basic_conv(x, p["b3d_1"])
    bd = basic_conv(bd, p["b3d_2"], padding=(1, 1))
    bd = basic_conv(bd, p["b3d_3"], stride=(2, 2))
    bp = pool3x3(x, op="max", stride=2, padding=0)
    return jnp.concatenate([b3, bd, bp], axis=-1)


def inception_c_fwd(x, p):
    b1 = basic_conv(x, p["b1"])
    b7 = basic_conv(x, p["b7_1"])
    b7 = basic_conv(b7, p["b7_2"], padding=(0, 3))
    b7 = basic_conv(b7, p["b7_3"], padding=(3, 0))
    bd = basic_conv(x, p["b7d_1"])
    bd = basic_conv(bd, p["b7d_2"], padding=(3, 0))
    bd = basic_conv(bd, p["b7d_3"], padding=(0, 3))
    bd = basic_conv(bd, p["b7d_4"], padding=(3, 0))
    bd = basic_conv(bd, p["b7d_5"], padding=(0, 3))
    bp = pool3x3(x, op="avg", stride=1, padding=1)
    bp = basic_conv(bp, p["bp"])
    return jnp.concatenate([b1, b7, bd, bp], axis=-1)


def inception_d_fwd(x, p):
    b3 = basic_conv(x, p["b3_1"])
    b3 = basic_conv(b3, p["b3_2"], stride=(2, 2))
    b7 = basic_conv(x, p["b7_1"])
    b7 = basic_conv(b7, p["b7_2"], padding=(0, 3))
    b7 = basic_conv(b7, p["b7_3"], padding=(3, 0))
    b7 = basic_conv(b7, p["b7_4"], stride=(2, 2))
    bp = pool3x3(x, op="max", stride=2, padding=0)
    return jnp.concatenate([b3, b7, bp], axis=-1)


def inception_e_fwd(x, p):
    b1 = basic_conv(x, p["b1"])
    b3 = basic_conv(x, p["b3_1"])
    b3 = jnp.concatenate(
        [basic_conv(b3, p["b3_2a"], padding=(0, 1)),
         basic_conv(b3, p["b3_2b"], padding=(1, 0))], axis=-1)
    bd = basic_conv(x, p["b3d_1"])
    bd = basic_conv(bd, p["b3d_2"], padding=(1, 1))
    bd = jnp.concatenate(
        [basic_conv(bd, p["b3d_3a"], padding=(0, 1)),
         basic_conv(bd, p["b3d_3b"], padding=(1, 0))], axis=-1)
    bp = pool3x3(x, op="avg", stride=1, padding=1)
    bp = basic_conv(bp, p["bp"])
    return jnp.concatenate([b1, b3, bd, bp], axis=-1)


# ----------------------------------------------------------------------------
# Full Bilbily forward (InceptionV3 backbone, fc=Identity, eval mode)
# ----------------------------------------------------------------------------
def bilbily_forward(params, x_nchw, sex):
    p = params
    x = jnp.transpose(x_nchw, (0, 2, 3, 1)).astype(jnp.bfloat16)   # NCHW -> NHWC, bf16
    # stem
    x = basic_conv(x, p["Conv2d_1a_3x3"], stride=(2, 2))
    x = basic_conv(x, p["Conv2d_2a_3x3"])
    x = basic_conv(x, p["Conv2d_2b_3x3"], padding=(1, 1))
    x = pool3x3(x, op="max", stride=2, padding=0)
    x = basic_conv(x, p["Conv2d_3b_1x1"])
    x = basic_conv(x, p["Conv2d_4a_3x3"])
    x = pool3x3(x, op="max", stride=2, padding=0)
    # inception blocks
    x = inception_a_fwd(x, p["Mixed_5b"])
    x = inception_a_fwd(x, p["Mixed_5c"])
    x = inception_a_fwd(x, p["Mixed_5d"])
    x = inception_b_fwd(x, p["Mixed_6a"])
    x = inception_c_fwd(x, p["Mixed_6b"])
    x = inception_c_fwd(x, p["Mixed_6c"])
    x = inception_c_fwd(x, p["Mixed_6d"])
    x = inception_c_fwd(x, p["Mixed_6e"])
    # AuxLogits is skipped (eval mode / aux_logits disabled)
    x = inception_d_fwd(x, p["Mixed_7a"])
    x = inception_e_fwd(x, p["Mixed_7b"])
    x = inception_e_fwd(x, p["Mixed_7c"])
    # AdaptiveAvgPool2d((1,1)) + flatten; Dropout is identity in eval mode
    feat = jnp.mean(x.astype(jnp.float32), axis=(1, 2)).astype(jnp.bfloat16)   # (B, 2048)
    # sex branch: one_hot(sex, 2) -> Linear(2, 32)
    sex_oh = jax.nn.one_hot(sex.astype(jnp.int32), 2, dtype=jnp.bfloat16)
    sex_feat = linear(sex_oh, p["sex_fc"], relu=False)             # (B, 32)
    # head: cat -> Linear(2080, 1000) -> ReLU -> Linear(1000, 1)
    h = jnp.concatenate([feat, sex_feat], axis=1)                  # (B, 2080)
    h = linear(h, p["fc1"], relu=True)
    out = linear(h, p["fc2"], relu=False, out_dtype=jnp.float32)   # (B, 1)
    return out
    # TODO(synk): training-mode Dropout / AuxLogits branch intentionally omitted (eval semantics).


if __name__ == "__main__":
    key = jax.random.PRNGKey(0)
    kp, kx = jax.random.split(key, 2)
    params = init_params(kp)
    # Small but valid InceptionV3 input (>= 75 px), grayscale, NCHW like the PyTorch module.
    x = jax.random.normal(kx, (2, 1, 80, 80), dtype=jnp.float32)
    sex = jnp.array([0, 1], dtype=jnp.int32)
    out = bilbily_forward(params, x, sex)
    out = jax.block_until_ready(out)
    assert out.shape == (2, 1), out.shape
    assert bool(jnp.all(jnp.isfinite(out)))
    print("KERNEL_OK")
</pallas_src>

<mosaic_0001>
module attributes {stable_mosaic.version = 11 : i64} {
  func.func @_gemm_kernel(%arg0: i32, %arg1: i32, %arg2: memref<256x9xbf16, #tpu.memory_space<vmem>>, %arg3: memref<9x32xbf16, #tpu.memory_space<vmem>>, %arg4: memref<1x32xf32, #tpu.memory_space<vmem>>, %arg5: memref<256x32xbf16, #tpu.memory_space<vmem>>) attributes {dimension_semantics = [#tpu.dimension_semantics<parallel>, #tpu.dimension_semantics<parallel>], iteration_bounds = array<i64: 12, 1>, scalar_prefetch = 0 : i64, scratch_operands = 0 : i64, tpu.core_type = #tpu.core_type<tc>, window_params = [{transform_indices = @transform_0, window_bounds = array<i64: 256, 9>}, {transform_indices = @transform_1, window_bounds = array<i64: 9, 32>}, {transform_indices = @transform_2, window_bounds = array<i64: 1, 32>}, {transform_indices = @transform_3, window_bounds = array<i64: 256, 32>}]} {
    %c0 = arith.constant 0 : index
    %c0_0 = arith.constant 0 : index
    %0 = vector.load %arg2[%c0, %c0_0] : memref<256x9xbf16, #tpu.memory_space<vmem>>, vector<256x9xbf16>
    %c0_1 = arith.constant 0 : index
    %c0_2 = arith.constant 0 : index
    %1 = vector.load %arg3[%c0_1, %c0_2] : memref<9x32xbf16, #tpu.memory_space<vmem>>, vector<9x32xbf16>
    %cst = arith.constant dense<0.000000e+00> : vector<256x32xf32>
    %2 = tpu.matmul %0, %1, %cst {dimension_numbers = #tpu.dot_dimension_numbers<[1], [0], [0], [1], [0, 0, 1, 1], [], []>} : vector<256x9xbf16>, vector<9x32xbf16>, vector<256x32xf32> -> vector<256x32xf32>
    %c0_3 = arith.constant 0 : index
    %c0_4 = arith.constant 0 : index
    %3 = vector.load %arg4[%c0_3, %c0_4] : memref<1x32xf32, #tpu.memory_space<vmem>>, vector<1x32xf32>
    %4 = vector.broadcast %3 : vector<1x32xf32> to vector<256x32xf32>
    %5 = arith.addf %2, %4 : vector<256x32xf32>
    %cst_5 = arith.constant 0.000000e+00 : f32
    %6 = vector.broadcast %cst_5 : f32 to vector<256x32xf32>
    %7 = arith.maximumf %5, %6 : vector<256x32xf32>
    %8 = arith.truncf %7 : vector<256x32xf32> to vector<256x32xbf16>
    %c0_6 = arith.constant 0 : index
    %c0_7 = arith.constant 0 : index
    %9 = vector.load %arg5[%c0_6, %c0_7] : memref<256x32xbf16, #tpu.memory_space<vmem>>, vector<256x32xbf16>
    tpu.vector_store %arg5[%c0_6, %c0_7], %8 {strides = array<i32>} : memref<256x32xbf16, #tpu.memory_space<vmem>>, vector<256x32xbf16>,
    return
  }
  func.func @transform_0(%arg0: i32, %arg1: i32) -> (i32, i32) {
    %c0_i32 = arith.constant 0 : i32
    %c0_i32_0 = arith.constant 0 : i32
    return %arg0, %c0_i32 : i32, i32
  }
  func.func @transform_1(%arg0: i32, %arg1: i32) -> (i32, i32) {
    %c0_i32 = arith.constant 0 : i32
    %c0_i32_0 = arith.constant 0 : i32
    return %c0_i32, %arg1 : i32, i32
  }
  func.func @transform_2(%arg0: i32, %arg1: i32) -> (i32, i32) {
    %c0_i32 = arith.constant 0 : i32
    %c0_i32_0 = arith.constant 0 : i32
    return %c0_i32, %arg1 : i32, i32
  }
  func.func @transform_3(%arg0: i32, %arg1: i32) -> (i32, i32) {
    %c0_i32 = arith.constant 0 : i32
    return %arg0, %arg1 : i32, i32
  }
}

</mosaic_0001>

<bundles_post_ra>
// kernel: tpu_custom_call.1
= control target key start
LH: loop header
LB: loop body
LE: loop exit
PB: predicated region body
PF: predicated region fallthrough
CT: control target
= control target key end

     0   :  { %s1578_s12 = smov 0   ;;  %s1580_s13 = smov 0   ;;  %s1910_s0 = inlined_call_operand.vmem [shape: bf16[3042,9], index: 0, kind: input, shape index: {}]   ;;  %s1911_s1 = inlined_call_operand.vmem [shape: bf16[9,32], index: 1, kind: input, shape index: {}]   ;;  %s1912_s2 = inlined_call_operand.vmem [shape: f32[1,32], index: 2, kind: input, shape index: {}]   ;;  %s1913_s3 = inlined_call_operand.vmem [shape: bf16[3042,32], index: 3, kind: output, shape index: {}]  }
   0x1   :  { %s1582_s14 = smov 0   ;;  %s1584_s15 = smov 0  }
   0x2   :  { %s1586_s16 = smov 0  }
   0x3 LB: > { %s1150_s17 = sadd.s32 4294967295, %s1523_s16   ;;  %s25_s18 = sadd.s32 1, %s1519_s15  ;;  %s1523_s16 = sphi %s1586_s16, %s13_s16   ;;  %s1519_s15 = sphi %s1584_s15, %s1921_s15   ;;  %s1515_s14 = sphi %s1582_s14, %s1920_s14   ;;  %s1511_s13 = sphi %s1580_s13, %s1919_s13   ;;  %s1507_s12 = sphi %s1578_s12, %s1918_s12  }
   0x4   : > { %p27_p0 = scmp.ge.s32.totalorder %s25_s18, 12  ;;  %s112_s19 = sadd.s32 1, %s1511_s13 }
   0x5   : > { %p122_p1 = scmp.ne.s32.totalorder %s1511_s13, %s1507_s12  ;;  %p123_p2 = scmp.eq.s32.totalorder %s1150_s17, 11 }
   0x6   : > { %s1923_s18 = smov (%p27_p0, %s25_s18), 0  ;;  %p1156_p4 = scmp.ge.s32.totalorder %s1523_s16, 1 }
   0x7   : > { %p1610_p3 = por %p123_p2, %p122_p1  ;;  %s107_s21 = ssub.s32 %s1519_s15, %s1923_s18 }
   0x8   : > { %p177_p5 = scmp.lt.s32.totalorder %s1523_s16, 13  ;;  %p110_p6 = scmp.eq.s32.totalorder %s107_s21, 0 }
   0xa   : > { %p178_p7 = pnand %p1156_p4, %p177_p5 }
   0xb   : > { %s1619_s22 = scalar_select %p110_p6, %s1511_s13, %s112_s19  }
   0xc   : > { %181 = sbr.rel (%p178_p7) target bundleno = 342 (0x156), region = 32  ;;  %v1436_v0 = vld [vmem:[%s1911_s1] sm:$0x1f] (!%p178_p7)   ;;  %vm413_vm0 = vcmask (!%p178_p7), 1043456   ;;  %vm414_vm1 = vcmask (!%p178_p7), 1044480   ;;  %s1625_s25 = sshll.u32 (!%p178_p7), %s1515_s14, 5 }
   0xd   : > { %v1557_v1 = vmov (!%p178_p7), 65535   ;;  %p216_p8 = scmp.lt.s32.totalorder (!%p178_p7), %s1625_s25, 380  ;;  %vm364_vm2 = vcmask (!%p178_p7), 72704   ;;  %s208_s4 = sand.u32 (!%p178_p7), 1, %s1507_s12   ;;  %v1670_v21 = vld [vmem:[%s1912_s2] ss:$0 sm:$0xff] (!%p178_p7) }
   0xe   : > { %v415_v2 = vsel (!%p178_p7), %vm413_vm0, 4294967295, %v1557_v1  ;;  %s1157_s7 = sshll.u32 (!%p178_p7), %s208_s4, 7  ;;  %vm741_vm3 = vcmask (!%p178_p7), 257024  }
   0xf   : > { %v416_v3 = vsel (!%p178_p7), %vm414_vm1, %v415_v2, 0  ;;  %s1680_s8 = scalar_lea.vmem (!%p178_p7), [#allocation2], %s1157_s7  }
  0x10   : > { %v418_v4 = vand.u32 (!%p178_p7), %v1436_v0, %v416_v3 }
  0x12   : > { %1295 = vmatprep.subr.bf16.mxu0 (!%p178_p7), %v418_v4  ;;  %1329 = vmatprep.subr.bf16.mxu1 (!%p178_p7), %v418_v4 }
  0x13   : > { %s217_s26 = scalar_select %p216_p8, %s1625_s25, 380  ;;  %1296 = vmatpush3.bf16.msra.mxu0 %v418_v4  ;;  %1330 = vmatpush3.bf16.msra.mxu1 %v418_v4 }
  0x14   : > { %s782_s9 = ssub.s32 (%p1610_p3), 381, %s1625_s25  ;;  %s1275_s10 = sshll.u32 (%p1610_p3), %s1515_s14, 7 }
  0x15   : > { %s1159_s27 = sshll.u32 %s217_s26, 2  ;;  %p783_p9 = scmp.lt.s32.totalorder (%p1610_p3), %s782_s9, 32 }
  0x16   : > { %s1632_s30 = scalar_lea.vmem %s1910_s0, %s1159_s27  ;;  %s1777_s17 = scalar_lea.vmem (%p1610_p3), %s1913_s3, %s1275_s10  }
  0x17   : > { %v1437_v5 = vld [vmem:[%s1632_s30] sm:$0xff]   ;;  %v1439_v7 = vld [vmem:[%s1632_s30 + $0x8] sm:$0xff]   ;;  %v1441_v9 = vld [vmem:[%s1632_s30 + $0x10] sm:$0xff]  }
  0x18   : > { %v1438_v6 = vld [vmem:[%s1632_s30 + $0x40] sm:$0xff]   ;;  %1297 = vmatprep.mubr.msk.bf16.mxu0 %vm364_vm2, %v1437_v5  ;;  %v1440_v8 = vld [vmem:[%s1632_s30 + $0x48] sm:$0xff]   ;;  %v1442_v10 = vld [vmem:[%s1632_s30 + $0x50] sm:$0xff]  }
  0x19   : > { %1313 = vmatprep.mubr.msk.bf16.mxu1 %vm364_vm2, %v1438_v6  ;;  %1298 = vmatmul.mubr.msk.bf16.vlgmr.msra.gmra.mrb[0].mxu0 %vm364_vm2, %v1439_v7  ;;  %v1443_v11 = vld [vmem:[%s1632_s30 + $0x18] sm:$0xff]   ;;  %v1445_v13 = vld [vmem:[%s1632_s30 + $0x20] sm:$0xff]   ;;  %v1447_v15 = vld [vmem:[%s1632_s30 + $0x28] sm:$0xff]  }
  0x1a   : > { %1314 = vmatmul.mubr.msk.bf16.vlgmr.msra.gmra.mrb[0].mxu1 %vm364_vm2, %v1440_v8  ;;  %1301 = vmatprep.mubr.msk.bf16.mxu0 %vm364_vm2, %v1441_v9  ;;  %v1444_v12 = vld [vmem:[%s1632_s30 + $0x58] sm:$0xff]   ;;  %v1446_v14 = vld [vmem:[%s1632_s30 + $0x60] sm:$0xff]   ;;  %v1448_v16 = vld [vmem:[%s1632_s30 + $0x68] sm:$0xff]  }
  0x1b   : > { %1317 = vmatprep.mubr.msk.bf16.mxu1 %vm364_vm2, %v1442_v10  ;;  %v1449_v17 = vld [vmem:[%s1632_s30 + $0x30] sm:$0xff]   ;;  %v1451_v19 = vld [vmem:[%s1632_s30 + $0x38] sm:$0xff]  }
  0x1c   : > { %v1450_v18 = vld [vmem:[%s1632_s30 + $0x70] sm:$0xff]   ;;  %v1452_v20 = vld [vmem:[%s1632_s30 + $0x78] sm:$0xff]  }
  0x21   : > { %1302 = vmatmul.mubr.msk.bf16.gmra.mrb[4].mxu0 %vm364_vm2, %v1443_v11 }
  0x22   : > { %1318 = vmatmul.mubr.msk.bf16.gmra.mrb[4].mxu1 %vm364_vm2, %v1444_v12  ;;  %1305 = vmatprep.mubr.msk.bf16.mxu0 %vm364_vm2, %v1445_v13 }
  0x23   : > { %1321 = vmatprep.mubr.msk.bf16.mxu1 %vm364_vm2, %v1446_v14 }
  0x29   : > { %1306 = vmatmul.mubr.msk.bf16.gmra.mrb[8].mxu0 %vm364_vm2, %v1447_v15 }
  0x2a   : > { %1322 = vmatmul.mubr.msk.bf16.gmra.mrb[8].mxu1 %vm364_vm2, %v1448_v16  ;;  %1309 = vmatprep.mubr.msk.bf16.mxu0 %vm364_vm2, %v1449_v17 }
  0x2b   : > { %1325 = vmatprep.mubr.msk.bf16.mxu1 %vm364_vm2, %v1450_v18 }
  0x31   : > { %1310 = vmatmul.mubr.msk.bf16.gmra.mrb[12].mxu0 %vm364_vm2, %v1451_v19 }
  0x32   : > { %1326 = vmatmul.mubr.msk.bf16.gmra.mrb[12].mxu1 %vm364_vm2, %v1452_v20 }
  0xec   : > { %v1299_v22 = vpop.f32.mrb[0].mxu0 }
  0xed   : > { %v463_v23 = vadd.f32 %v1299_v22, %v1670_v21  ;;  %v1315_v24 = vpop.f32.mrb[0].mxu1  ;;  %v454_v25 = vpop.f32.mrb[1].mxu0 }
  0xee   : > { %v527_v26 = vadd.f32 %v1315_v24, %v1670_v21  ;;  %v455_v27 = vadd.f32 %v1670_v21, %v454_v25  ;;  %v518_v28 = vpop.f32.mrb[1].mxu1  ;;  %v1300_v29 = vpop.f32.mrb[2].mxu0 }
  0xef   : > { %v583_v30 = vmax.f32 %v463_v23, 0.0  ;;  %v519_v31 = vadd.f32 %v1670_v21, %v518_v28  ;;  %v466_v32 = vadd.f32 %v1300_v29, %v1670_v21  ;;  %v1316_v33 = vpop.f32.mrb[2].mxu1  ;;  %v457_v34 = vpop.f32.mrb[3].mxu0 }
  0xf0   : > { %v599_v35 = vmax.f32 %v527_v26, 0.0  ;;  %v581_v36 = vmax.f32 %v455_v27, 0.0  ;;  %v530_v37 = vadd.f32 %v1316_v33, %v1670_v21  ;;  %v458_v38 = vadd.f32 %v1670_v21, %v457_v34  ;;  %v521_v39 = vpop.f32.mrb[3].mxu1 }
  0xf1   : > { %v1245_v40 = vpack.c.bf16 %v583_v30, %v583_v30  ;;  %v597_v41 = vmax.f32 %v519_v31, 0.0  ;;  %v584_v42 = vmax.f32 %v466_v32, 0.0  ;;  %v522_v43 = vadd.f32 %v1670_v21, %v521_v39 }
  0xf2   : > { %v1261_v44 = vpack.c.bf16 %v599_v35, %v599_v35  ;;  %v1243_v45 = vpack.c.bf16 %v581_v36, %v581_v36  ;;  %v600_v46 = vmax.f32 %v530_v37, 0.0  ;;  %v582_v47 = vmax.f32 %v458_v38, 0.0 }
  0xf3   : > { %744 = vst.msk [vmem:[%s1680_s8 + $0x8] sm:$0xf] %vm741_vm3, %v1245_v40  ;;  %v1259_v48 = vpack.c.bf16 %v597_v41, %v597_v41  ;;  %v1246_v49 = vpack.c.bf16 %v584_v42, %v584_v42  ;;  %v598_v50 = vmax.f32 %v522_v43, 0.0 }
  0xf4   : > { %760 = vst.msk [vmem:[%s1680_s8 + $0x48] sm:$0xf] %vm741_vm3, %v1261_v44  ;;  %742 = vst.msk [vmem:[%s1680_s8] sm:$0xf] %vm741_vm3, %v1243_v45  ;;  %v1262_v51 = vpack.c.bf16 %v600_v46, %v600_v46  ;;  %v1244_v52 = vpack.c.bf16 %v582_v47, %v582_v47  ;;  %v1303_v53 = vpop.f32.mrb[4].mxu0 }
  0xf5   : > { %758 = vst.msk [vmem:[%s1680_s8 + $0x40] sm:$0xf] %vm741_vm3, %v1259_v48  ;;  %745 = vst.msk [vmem:[%s1680_s8 + $0xc] sm:$0xf] %vm741_vm3, %v1246_v49  ;;  %v1260_v54 = vpack.c.bf16 %v598_v50, %v598_v50  ;;  %v479_v55 = vadd.f32 %v1303_v53, %v1670_v21  ;;  %v1319_v56 = vpop.f32.mrb[4].mxu1  ;;  %v470_v57 = vpop.f32.mrb[5].mxu0 }
  0xf6   : > { %761 = vst.msk [vmem:[%s1680_s8 + $0x4c] sm:$0xf] %vm741_vm3, %v1262_v51  ;;  %743 = vst.msk [vmem:[%s1680_s8 + $0x4] sm:$0xf] %vm741_vm3, %v1244_v52  ;;  %v543_v58 = vadd.f32 %v1319_v56, %v1670_v21  ;;  %v471_v59 = vadd.f32 %v1670_v21, %v470_v57  ;;  %v534_v60 = vpop.f32.mrb[5].mxu1  ;;  %v1304_v61 = vpop.f32.mrb[6].mxu0 }
  0xf7   : > { %759 = vst.msk [vmem:[%s1680_s8 + $0x44] sm:$0xf] %vm741_vm3, %v1260_v54  ;;  %v587_v62 = vmax.f32 %v479_v55, 0.0  ;;  %v535_v63 = vadd.f32 %v1670_v21, %v534_v60  ;;  %v482_v0 = vadd.f32 %v1304_v61, %v1670_v21  ;;  %v1320_v1 = vpop.f32.mrb[6].mxu1  ;;  %v473_v2 = vpop.f32.mrb[7].mxu0 }
  0xf8   : > { %v603_v3 = vmax.f32 %v543_v58, 0.0  ;;  %v585_v4 = vmax.f32 %v471_v59, 0.0  ;;  %v546_v5 = vadd.f32 %v1320_v1, %v1670_v21  ;;  %v474_v6 = vadd.f32 %v1670_v21, %v473_v2  ;;  %v537_v7 = vpop.f32.mrb[7].mxu1 }
  0xf9   : > { %v1249_v8 = vpack.c.bf16 %v587_v62, %v587_v62  ;;  %v601_v9 = vmax.f32 %v535_v63, 0.0  ;;  %v588_v10 = vmax.f32 %v482_v0, 0.0  ;;  %v538_v11 = vadd.f32 %v1670_v21, %v537_v7 }
  0xfa   : > { %v1265_v12 = vpack.c.bf16 %v603_v3, %v603_v3  ;;  %v1247_v13 = vpack.c.bf16 %v585_v4, %v585_v4  ;;  %v604_v14 = vmax.f32 %v546_v5, 0.0  ;;  %v586_v15 = vmax.f32 %v474_v6, 0.0 }
  0xfb   : > { %748 = vst.msk [vmem:[%s1680_s8 + $0x18] sm:$0xf] %vm741_vm3, %v1249_v8  ;;  %v1263_v16 = vpack.c.bf16 %v601_v9, %v601_v9  ;;  %v1250_v17 = vpack.c.bf16 %v588_v10, %v588_v10  ;;  %v602_v18 = vmax.f32 %v538_v11, 0.0 }
  0xfc   : > { %764 = vst.msk [vmem:[%s1680_s8 + $0x58] sm:$0xf] %vm741_vm3, %v1265_v12  ;;  %746 = vst.msk [vmem:[%s1680_s8 + $0x10] sm:$0xf] %vm741_vm3, %v1247_v13  ;;  %v1266_v19 = vpack.c.bf16 %v604_v14, %v604_v14  ;;  %v1248_v20 = vpack.c.bf16 %v586_v15, %v586_v15  ;;  %v1307_v22 = vpop.f32.mrb[8].mxu0 }
  0xfd   : > { %762 = vst.msk [vmem:[%s1680_s8 + $0x50] sm:$0xf] %vm741_vm3, %v1263_v16  ;;  %749 = vst.msk [vmem:[%s1680_s8 + $0x1c] sm:$0xf] %vm741_vm3, %v1250_v17  ;;  %v1264_v23 = vpack.c.bf16 %v602_v18, %v602_v18  ;;  %v495_v24 = vadd.f32 %v1307_v22, %v1670_v21  ;;  %v1323_v25 = vpop.f32.mrb[8].mxu1  ;;  %v486_v26 = vpop.f32.mrb[9].mxu0 }
  0xfe   : > { %765 = vst.msk [vmem:[%s1680_s8 + $0x5c] sm:$0xf] %vm741_vm3, %v1266_v19  ;;  %747 = vst.msk [vmem:[%s1680_s8 + $0x14] sm:$0xf] %vm741_vm3, %v1248_v20  ;;  %v559_v27 = vadd.f32 %v1323_v25, %v1670_v21  ;;  %v487_v28 = vadd.f32 %v1670_v21, %v486_v26  ;;  %v550_v29 = vpop.f32.mrb[9].mxu1  ;;  %v1308_v30 = vpop.f32.mrb[10].mxu0 }
  0xff   : > { %763 = vst.msk [vmem:[%s1680_s8 + $0x54] sm:$0xf] %vm741_vm3, %v1264_v23  ;;  %v591_v31 = vmax.f32 %v495_v24, 0.0  ;;  %v551_v32 = vadd.f32 %v1670_v21, %v550_v29  ;;  %v498_v33 = vadd.f32 %v1308_v30, %v1670_v21  ;;  %v1324_v34 = vpop.f32.mrb[10].mxu1  ;;  %v489_v35 = vpop.f32.mrb[11].mxu0 }
 0x100   : > { %v607_v36 = vmax.f32 %v559_v27, 0.0  ;;  %v589_v37 = vmax.f32 %v487_v28, 0.0  ;;  %v562_v38 = vadd.f32 %v1324_v34, %v1670_v21  ;;  %v490_v39 = vadd.f32 %v1670_v21, %v489_v35  ;;  %v553_v40 = vpop.f32.mrb[11].mxu1 }
 0x101   : > { %v1253_v41 = vpack.c.bf16 %v591_v31, %v591_v31  ;;  %v605_v42 = vmax.f32 %v551_v32, 0.0  ;;  %v592_v43 = vmax.f32 %v498_v33, 0.0  ;;  %v554_v44 = vadd.f32 %v1670_v21, %v553_v40 }
 0x102   : > { %v1269_v45 = vpack.c.bf16 %v607_v36, %v607_v36  ;;  %v1251_v46 = vpack.c.bf16 %v589_v37, %v589_v37  ;;  %v608_v47 = vmax.f32 %v562_v38, 0.0  ;;  %v590_v48 = vmax.f32 %v490_v39, 0.0 }
 0x103   : > { %752 = vst.msk [vmem:[%s1680_s8 + $0x28] sm:$0xf] %vm741_vm3, %v1253_v41  ;;  %v1267_v49 = vpack.c.bf16 %v605_v42, %v605_v42  ;;  %v1254_v50 = vpack.c.bf16 %v592_v43, %v592_v43  ;;  %v606_v51 = vmax.f32 %v554_v44, 0.0 }
 0x104   : > { %768 = vst.msk [vmem:[%s1680_s8 + $0x68] sm:$0xf] %vm741_vm3, %v1269_v45  ;;  %750 = vst.msk [vmem:[%s1680_s8 + $0x20] sm:$0xf] %vm741_vm3, %v1251_v46  ;;  %v1270_v52 = vpack.c.bf16 %v608_v47, %v608_v47  ;;  %v1252_v53 = vpack.c.bf16 %v590_v48, %v590_v48  ;;  %v1311_v54 = vpop.f32.mrb[12].mxu0 }
 0x105   : > { %766 = vst.msk [vmem:[%s1680_s8 + $0x60] sm:$0xf] %vm741_vm3, %v1267_v49  ;;  %753 = vst.msk [vmem:[%s1680_s8 + $0x2c] sm:$0xf] %vm741_vm3, %v1254_v50  ;;  %v1268_v55 = vpack.c.bf16 %v606_v51, %v606_v51  ;;  %v511_v56 = vadd.f32 %v1311_v54, %v1670_v21  ;;  %v1327_v57 = vpop.f32.mrb[12].mxu1  ;;  %v502_v58 = vpop.f32.mrb[13].mxu0 }
 0x106   : > { %769 = vst.msk [vmem:[%s1680_s8 + $0x6c] sm:$0xf] %vm741_vm3, %v1270_v52  ;;  %751 = vst.msk [vmem:[%s1680_s8 + $0x24] sm:$0xf] %vm741_vm3, %v1252_v53  ;;  %v575_v59 = vadd.f32 %v1327_v57, %v1670_v21  ;;  %v503_v60 = vadd.f32 %v1670_v21, %v502_v58  ;;  %v566_v61 = vpop.f32.mrb[13].mxu1  ;;  %v1312_v62 = vpop.f32.mrb[14].mxu0 }
 0x107   : > { %767 = vst.msk [vmem:[%s1680_s8 + $0x64] sm:$0xf] %vm741_vm3, %v1268_v55  ;;  %v595_v63 = vmax.f32 %v511_v56, 0.0  ;;  %v567_v0 = vadd.f32 %v1670_v21, %v566_v61  ;;  %v514_v1 = vadd.f32 %v1312_v62, %v1670_v21  ;;  %v1328_v2 = vpop.f32.mrb[14].mxu1  ;;  %v505_v3 = vpop.f32.mrb[15].mxu0 }
 0x108   : > { %v611_v4 = vmax.f32 %v575_v59, 0.0  ;;  %v593_v5 = vmax.f32 %v503_v60, 0.0  ;;  %v578_v6 = vadd.f32 %v1328_v2, %v1670_v21  ;;  %v506_v7 = vadd.f32 %v1670_v21, %v505_v3  ;;  %v569_v8 = vpop.f32.mrb[15].mxu1 }
 0x109   : > { %v1257_v9 = vpack.c.bf16 %v595_v63, %v595_v63  ;;  %v609_v10 = vmax.f32 %v567_v0, 0.0  ;;  %v596_v11 = vmax.f32 %v514_v1, 0.0  ;;  %v570_v12 = vadd.f32 %v1670_v21, %v569_v8  ;;  %780 = sbr.rel (!%p1610_p3) target bundleno = 342 (0x156), region = 36 }
 0x10a   : > { %v1273_v13 = vpack.c.bf16 %v611_v4, %v611_v4  ;;  %v1255_v14 = vpack.c.bf16 %v593_v5, %v593_v5  ;;  %v612_v15 = vmax.f32 %v578_v6, 0.0  ;;  %v594_v16 = vmax.f32 %v506_v7, 0.0 }
 0x10b   : > { %756 = vst.msk [vmem:[%s1680_s8 + $0x38] sm:$0xf] %vm741_vm3, %v1257_v9  ;;  %v1271_v17 = vpack.c.bf16 %v609_v10, %v609_v10  ;;  %v1258_v18 = vpack.c.bf16 %v596_v11, %v596_v11  ;;  %v610_v19 = vmax.f32 %v570_v12, 0.0 }
 0x10c   : > { %772 = vst.msk [vmem:[%s1680_s8 + $0x78] sm:$0xf] %vm741_vm3, %v1273_v13  ;;  %754 = vst.msk [vmem:[%s1680_s8 + $0x30] sm:$0xf] %vm741_vm3, %v1255_v14  ;;  %v1274_v20 = vpack.c.bf16 %v612_v15, %v612_v15  ;;  %v1256_v22 = vpack.c.bf16 %v594_v16, %v594_v16 }
 0x10d   : > { %770 = vst.msk [vmem:[%s1680_s8 + $0x70] sm:$0xf] %vm741_vm3, %v1271_v17  ;;  %757 = vst.msk [vmem:[%s1680_s8 + $0x3c] sm:$0xf] %vm741_vm3, %v1258_v18  ;;  %v1272_v21 = vpack.c.bf16 %v610_v19, %v610_v19 }
 0x10e   : > { %773 = vst.msk [vmem:[%s1680_s8 + $0x7c] sm:$0xf] %vm741_vm3, %v1274_v20  ;;  %755 = vst.msk [vmem:[%s1680_s8 + $0x34] sm:$0xf] %vm741_vm3, %v1256_v22 }
 0x10f   : > { %771 = vst.msk [vmem:[%s1680_s8 + $0x74] sm:$0xf] %vm741_vm3, %v1272_v21 }
 0x110   : > { %s1925_s9 = smov (!%p783_p9, %s782_s9), 32 }
 0x111   : > { %s1228_s19 = sshll.u32 %s1925_s9, 6 }
 0x112   : > { %p1231_p10 = scmp.eq.s32.totalorder %s1228_s19, 0 }
 0x113   : > { %s1783_s21 = sshrl.u32 (!%p1231_p10), %s1925_s9, 5 }
 0x114   : > { %792 = sbr.rel (%p1231_p10) target bundleno = 342 (0x156), region = 40  ;;  %p1232_p11 = scmp.le.s32.totalorder (!%p1231_p10), %s1783_s21, 0 }
 0x11b   : > { %1080 = sbr.rel (%p1232_p11) target bundleno = 321 (0x141), region = 118  ;;  %s1915_s14 = smov (!%p1232_p11), %s1777_s17 }
 0x11c   : > { %s1916_s20 = smov (!%p1232_p11), %s1680_s8  ;;  %s1792_s23 = smov (!%p1232_p11), 0  }
 0x11d   : > { %s1794_s24 = smov (!%p1232_p11), 0  }
 0x122 LB: >> { %v808_v23 = vld [vmem:[%s1531_s20] sm:$0xf]  ;;  %v810_v24 = vld [vmem:[%s1531_s20 + $0x4] sm:$0xf]  ;;  %v812_v25 = vld [vmem:[%s1531_s20 + $0x8] sm:$0xf]  ;;  %s1539_s24 = sphi %s1794_s24, %s802_s24   ;;  %s1535_s23 = sphi %s1792_s23, %s1917_s23   ;;  %s1531_s20 = sphi %s1916_s20, %s877_s20   ;;  %s1527_s14 = sphi %s1915_s14, %s878_s14  }
 0x123   : >> { %809 = vst [vmem:[%s1527_s14] sm:$0xf] %v808_v23  ;;  %811 = vst [vmem:[%s1527_s14 + $0x4] sm:$0xf] %v810_v24  ;;  %v814_v26 = vld [vmem:[%s1531_s20 + $0xc] sm:$0xf]  ;;  %s872_s25 = sadd.s32 1, %s1535_s23 }
 0x124   : >> { %813 = vst [vmem:[%s1527_s14 + $0x8] sm:$0xf] %v812_v25  ;;  %v816_v27 = vld [vmem:[%s1531_s20 + $0x10] sm:$0xf]  ;;  %v818_v28 = vld [vmem:[%s1531_s20 + $0x14] sm:$0xf]  ;;  %p873_p12 = scmp.ge.s32.totalorder %s872_s25, %s1783_s21 }
 0x125   : >> { %815 = vst [vmem:[%s1527_s14 + $0xc] sm:$0xf] %v814_v26  ;;  %817 = vst [vmem:[%s1527_s14 + $0x10] sm:$0xf] %v816_v27  ;;  %v820_v29 = vld [vmem:[%s1531_s20 + $0x18] sm:$0xf] }
 0x126   : >> { %819 = vst [vmem:[%s1527_s14 + $0x14] sm:$0xf] %v818_v28  ;;  %v822_v30 = vld [vmem:[%s1531_s20 + $0x1c] sm:$0xf]  ;;  %v824_v31 = vld [vmem:[%s1531_s20 + $0x20] sm:$0xf] }
 0x127   : >> { %821 = vst [vmem:[%s1527_s14 + $0x18] sm:$0xf] %v820_v29  ;;  %823 = vst [vmem:[%s1527_s14 + $0x1c] sm:$0xf] %v822_v30  ;;  %v826_v32 = vld [vmem:[%s1531_s20 + $0x24] sm:$0xf] }
 0x128   : >> { %825 = vst [vmem:[%s1527_s14 + $0x20] sm:$0xf] %v824_v31  ;;  %v828_v33 = vld [vmem:[%s1531_s20 + $0x28] sm:$0xf]  ;;  %v830_v34 = vld [vmem:[%s1531_s20 + $0x2c] sm:$0xf] }
 0x129   : >> { %827 = vst [vmem:[%s1527_s14 + $0x24] sm:$0xf] %v826_v32  ;;  %829 = vst [vmem:[%s1527_s14 + $0x28] sm:$0xf] %v828_v33  ;;  %v832_v35 = vld [vmem:[%s1531_s20 + $0x30] sm:$0xf] }
 0x12a   : >> { %831 = vst [vmem:[%s1527_s14 + $0x2c] sm:$0xf] %v830_v34  ;;  %v834_v36 = vld [vmem:[%s1531_s20 + $0x34] sm:$0xf]  ;;  %v836_v37 = vld [vmem:[%s1531_s20 + $0x38] sm:$0xf] }
 0x12b   : >> { %833 = vst [vmem:[%s1527_s14 + $0x30] sm:$0xf] %v832_v35  ;;  %835 = vst [vmem:[%s1527_s14 + $0x34] sm:$0xf] %v834_v36  ;;  %v838_v38 = vld [vmem:[%s1531_s20 + $0x3c] sm:$0xf] }
 0x12c   : >> { %837 = vst [vmem:[%s1527_s14 + $0x38] sm:$0xf] %v836_v37  ;;  %v840_v39 = vld [vmem:[%s1531_s20 + $0x40] sm:$0xf]  ;;  %v842_v40 = vld [vmem:[%s1531_s20 + $0x44] sm:$0xf] }
 0x12d   : >> { %839 = vst [vmem:[%s1527_s14 + $0x3c] sm:$0xf] %v838_v38  ;;  %841 = vst [vmem:[%s1527_s14 + $0x40] sm:$0xf] %v840_v39  ;;  %v844_v41 = vld [vmem:[%s1531_s20 + $0x48] sm:$0xf] }
 0x12e   : >> { %843 = vst [vmem:[%s1527_s14 + $0x44] sm:$0xf] %v842_v40  ;;  %v846_v42 = vld [vmem:[%s1531_s20 + $0x4c] sm:$0xf]  ;;  %v848_v43 = vld [vmem:[%s1531_s20 + $0x50] sm:$0xf] }
 0x12f   : >> { %845 = vst [vmem:[%s1527_s14 + $0x48] sm:$0xf] %v844_v41  ;;  %847 = vst [vmem:[%s1527_s14 + $0x4c] sm:$0xf] %v846_v42  ;;  %v850_v44 = vld [vmem:[%s1531_s20 + $0x54] sm:$0xf] }
 0x130   : >> { %849 = vst [vmem:[%s1527_s14 + $0x50] sm:$0xf] %v848_v43  ;;  %v852_v45 = vld [vmem:[%s1531_s20 + $0x58] sm:$0xf]  ;;  %v854_v46 = vld [vmem:[%s1531_s20 + $0x5c] sm:$0xf] }
 0x131   : >> { %851 = vst [vmem:[%s1527_s14 + $0x54] sm:$0xf] %v850_v44  ;;  %853 = vst [vmem:[%s1527_s14 + $0x58] sm:$0xf] %v852_v45  ;;  %v856_v47 = vld [vmem:[%s1531_s20 + $0x60] sm:$0xf] }
 0x132   : >> { %855 = vst [vmem:[%s1527_s14 + $0x5c] sm:$0xf] %v854_v46  ;;  %v858_v48 = vld [vmem:[%s1531_s20 + $0x64] sm:$0xf]  ;;  %v860_v49 = vld [vmem:[%s1531_s20 + $0x68] sm:$0xf] }
 0x133   : >> { %857 = vst [vmem:[%s1527_s14 + $0x60] sm:$0xf] %v856_v47  ;;  %859 = vst [vmem:[%s1527_s14 + $0x64] sm:$0xf] %v858_v48  ;;  %v862_v50 = vld [vmem:[%s1531_s20 + $0x6c] sm:$0xf] }
 0x134   : >> { %861 = vst [vmem:[%s1527_s14 + $0x68] sm:$0xf] %v860_v49  ;;  %v864_v51 = vld [vmem:[%s1531_s20 + $0x70] sm:$0xf]  ;;  %v866_v52 = vld [vmem:[%s1531_s20 + $0x74] sm:$0xf] }
 0x135   : >> { %863 = vst [vmem:[%s1527_s14 + $0x6c] sm:$0xf] %v862_v50  ;;  %865 = vst [vmem:[%s1527_s14 + $0x70] sm:$0xf] %v864_v51  ;;  %v868_v53 = vld [vmem:[%s1531_s20 + $0x78] sm:$0xf] }
 0x136   : >> { %867 = vst [vmem:[%s1527_s14 + $0x74] sm:$0xf] %v866_v52  ;;  %v870_v54 = vld [vmem:[%s1531_s20 + $0x7c] sm:$0xf]  ;;  %869 = vst [vmem:[%s1527_s14 + $0x78] sm:$0xf] %v868_v53 }
 0x137   : >> { %871 = vst [vmem:[%s1527_s14 + $0x7c] sm:$0xf] %v870_v54  ;;  %s1927_s25 = smov (%p873_p12, %s872_s25), 0  ;;  %s802_s24 = sadd.s32 1, %s1539_s24  }
 0x138   : >> { %s1233_s26 = sshll.u32 %s1927_s25, 7  ;;  %p801_p13 = scmp.ge.s32.totalorder %s802_s24, %s1783_s21 }
 0x139   : >> { %s877_s20 = scalar_lea.vmem %s1680_s8, %s1233_s26 [#allocation2]   ;;  %s878_s14 = scalar_lea.vmem %s1777_s17, %s1233_s26  }
 0x13a   : >> { %s1917_s23 = smov %s1927_s25  ;;  %804 = sbr.rel (!%p801_p13) target bundleno = 290 (0x122), region = 124 }
 0x141 PF: > { %s1887_s27 = sand.u32 31, %s1925_s9   ;;  %s1276_s28 = sshll.u32 %s1783_s21, 7 }
 0x142   : > { %s883_s29 = scalar_lea.vmem %s1680_s8, %s1276_s28 [#allocation2]   ;;  %s885_s30 = scalar_lea.vmem %s1777_s17, %s1276_s28  }
 0x143   : > { %p1238_p0 = scmp.le.s32.totalorder %s1887_s27, 0 }
 0x144   : > { %s1541_s4 = smov (!%p1238_p0), %s885_s30   ;;  %s1545_s5 = smov (!%p1238_p0), %s883_s29  }
 0x145   : > { %1094 = sbr.rel (%p1238_p0) target bundleno = 342 (0x156), region = 129  ;;  %s1549_s6 = smov (!%p1238_p0), 0  }
 0x146   : > { %s1553_s7 = smov (!%p1238_p0), 0  }
 0x14c LB: >> { %v895_v55 = vld [vmem:[%s1547_s5] sm:$0xf]  ;;  %s897_s9 = sadd.s32 1, %s1551_s6  ;;  %s889_s7 = sadd.s32 1, %s1555_s7   ;;  %s1555_s7 = sphi %s1553_s7, %s889_s7   ;;  %s1551_s6 = sphi %s1549_s6, %s1550_s6   ;;  %s1547_s5 = sphi %s1545_s5, %s902_s5   ;;  %s1543_s4 = sphi %s1541_s4, %s903_s4  }
 0x14d   : >> { %896 = vst [vmem:[%s1543_s4] sm:$0xf] %v895_v55  ;;  %p898_p1 = scmp.ge.s32.totalorder %s897_s9, %s1887_s27  ;;  %p888_p2 = scmp.ge.s32.totalorder %s889_s7, %s1887_s27 }
 0x14f   : >> { %s1929_s9 = smov (%p898_p1, %s897_s9), 0  ;;  %891 = sbr.rel (!%p888_p2) target bundleno = 332 (0x14c), region = 135 }
 0x150   : >> { %s1239_s8 = sshll.u32 %s1929_s9, 2  ;;  %s1550_s6 = smov %s1929_s9  }
 0x151   : >> { %s902_s5 = scalar_lea.vmem %s883_s29, %s1239_s8 [#allocation2]   ;;  %s903_s4 = scalar_lea.vmem %s885_s30, %s1239_s8  }
 0x156 PF: > { %s13_s16 = sadd.s32 1, %s1523_s16   ;;  %s1918_s12 = smov %s1511_s13 }
 0x157   : > { %p10_p3 = scmp.ge.s32.totalorder %s13_s16, 14   ;;  %s1919_s13 = smov %s1619_s22 }
 0x158   : > { %s1920_s14 = smov %s1519_s15  ;;  %s1921_s15 = smov %s1923_s18 }
 0x159   :  { %12 = sbr.rel (!%p10_p3) target bundleno = 3 (0x3), region = 146 }

</bundles_post_ra>
